<compile_context>
chip_gen: v7x
topology: tpu7x:2x2x1
jax: 0.10.0
libtpu: 0.0.40
codegen_flags: <defaults>
</compile_context>

<pallas_src>
import math
import jax
import jax.numpy as jnp
from jax.experimental import pallas as pl
from jax.experimental.pallas import tpu as pltpu


def _round_up(n, m):
    return ((n + m - 1) // m) * m


def _pick_hidden_tile(H, want, align=128):
    """Largest lane-aligned tile <= want that divides H (falls back to H)."""
    want = max(align, min(want, H))
    if H % want == 0 and (want % align == 0 or want == H):
        return want
    best = None
    t = align
    while t <= want:
        if H % t == 0:
            best = t
        t += align
    return best if best is not None else H


def _gelu_tanh(h):
    """tanh-approx GELU in f32 (matches torch.nn.GELU(approximate='tanh')).

    Factored to minimize VPU multiplies; the tanh goes to the EUP slot.
    """
    c = 0.7978845608028654            # sqrt(2/pi)
    c3 = 0.044715 * c
    inner = h * (c + c3 * (h * h))
    return 0.5 * h * (1.0 + jnp.tanh(inner))


# -----------------------------------------------------------------------------
# Kernels
# -----------------------------------------------------------------------------

def mlp_kernel_resident(x_ref, w1_ref, b1_ref, w2_ref, b2_ref, o_ref):
    """Whole hidden dim resident: y = gelu(x@W1+b1) @ W2 + b2 in one shot.

    grid = (row_tiles,). Weight/bias index maps are constant, so W1/W2/b1/b2
    are DMA'd once and reused across row tiles; no accumulator scratch needed.
    """
    h = jnp.dot(x_ref[...], w1_ref[...], preferred_element_type=jnp.float32)
    h = _gelu_tanh(h + b1_ref[...].astype(jnp.float32))
    y = jnp.dot(h.astype(w2_ref.dtype), w2_ref[...],
                preferred_element_type=jnp.float32)
    o_ref[...] = (y + b2_ref[...].astype(jnp.float32)).astype(o_ref.dtype)


def mlp_kernel_tiled(x_ref, w1_ref, b1_ref, w2_ref, b2_ref, o_ref, acc_ref):
    """One (row-tile, hidden-tile) step; c_proj accumulates into f32 scratch.

    x_ref:  (tm, C)   w1_ref: (C, th)   b1_ref: (1, th)
    w2_ref: (th, C)   b2_ref: (1, C)    o_ref:  (tm, C)
    acc_ref: (tm, C) f32 VMEM scratch.
    """
    k = pl.program_id(1)

    @pl.when(k == 0)
    def _():
        acc_ref[...] = jnp.zeros_like(acc_ref)

    h = jnp.dot(x_ref[...], w1_ref[...], preferred_element_type=jnp.float32)
    h = _gelu_tanh(h + b1_ref[...].astype(jnp.float32))
    acc_ref[...] += jnp.dot(h.astype(w2_ref.dtype), w2_ref[...],
                            preferred_element_type=jnp.float32)

    @pl.when(k == pl.num_programs(1) - 1)
    def _():
        o_ref[...] = (acc_ref[...] +
                      b2_ref[...].astype(jnp.float32)).astype(o_ref.dtype)


# -----------------------------------------------------------------------------
# Tile selection / VMEM budgeting
# -----------------------------------------------------------------------------

def _vmem_estimate(tm, th, C, in_bytes, out_bytes, *, fused):
    """Rough VMEM footprint: double-buffered tiles + f32 GELU temps (+ acc)."""
    buf = 2                                   # BlockSpec double-buffering
    x_b = buf * tm * C * in_bytes
    o_b = buf * tm * C * out_bytes
    w1_b = buf * C * th * in_bytes
    w2_b = buf * th * C * in_bytes
    bias = buf * (th + C) * 4
    temps = 4 * tm * th * 4                   # h + ~3 elementwise f32 temps
    acc = 0 if fused else tm * C * 4
    return x_b + o_b + w1_b + w2_b + bias + temps + acc


def _select_tiles(M, C, H, in_bytes, out_bytes, tm_want, th_want, vmem_cap,
                  prefer_resident=True):
    # Row tile: keep the MXU full even for tiny M (pad M rather than shrinking
    # tm below 256); large tm amortizes weight (re-)streaming at large M.
    tm = max(256, min(tm_want, _round_up(M, 256)))
    # Keep >= 2 row tiles when there is enough work so the "parallel" row axis
    # can feed both TensorCores (megacore / v7x).
    if M > tm and _round_up(M, tm) // tm < 2:
        tm = max(256, tm // 2)

    # Best case: full hidden dim resident -> weights streamed from HBM once.
    if prefer_resident and _vmem_estimate(
            tm, H, C, in_bytes, out_bytes, fused=True) <= vmem_cap:
        return tm, H, True

    # Otherwise tile H. Prefer shrinking th (weight tile + GELU temps) over tm.
    th = _pick_hidden_tile(H, th_want)
    while (th > 128 and
           _vmem_estimate(tm, th, C, in_bytes, out_bytes, fused=False) > vmem_cap):
        new_th = _pick_hidden_tile(H, th - 128)
        if new_th >= th:
            break
        th = new_th
    while (tm > 256 and
           _vmem_estimate(tm, th, C, in_bytes, out_bytes, fused=False) > vmem_cap):
        tm //= 2
    return tm, th, False


# -----------------------------------------------------------------------------
# Wrapper
# -----------------------------------------------------------------------------

def mlp_forward(x, w1, b1, w2, b2, *, compute_dtype=jnp.bfloat16,
                tm=512, th=512, vmem_cap_bytes=56 << 20, prefer_resident=True):
    """Fused GPT-2 MLP forward: gelu(x @ w1 + b1) @ w2 + b2.

    x: (B, T, C); w1: (C, H); b1: (H,); w2: (H, C); b2: (C,), H = 4*C.
    Matmuls run in `compute_dtype` (bf16 by default -> fast MXU path, halved
    weight HBM traffic) with f32 accumulation; output keeps x.dtype.
    # TODO(synk): optional fp8 weight storage + per-channel dequant on v7x.
    """
    B, T, C = x.shape
    H = w1.shape[1]
    M = B * T
    out_dtype = x.dtype

    cd = jnp.dtype(compute_dtype) if compute_dtype is not None else jnp.dtype(x.dtype)
    in_bytes = cd.itemsize
    out_bytes = jnp.dtype(out_dtype).itemsize

    tm, th, resident = _select_tiles(M, C, H, in_bytes, out_bytes, tm, th,
                                     vmem_cap_bytes, prefer_resident)
    M_pad = _round_up(M, tm)

    x2d = x.reshape(M, C).astype(cd)
    if M_pad != M:
        x2d = jnp.pad(x2d, ((0, M_pad - M), (0, 0)))
    w1c = w1.astype(cd)
    w2c = w2.astype(cd)
    b1_2d = b1.reshape(1, H).astype(jnp.float32)
    b2_2d = b2.reshape(1, C).astype(jnp.float32)

    n_row = M_pad // tm
    n_hid = H // th
    nbytes = lambda a: a.size * a.dtype.itemsize
    weight_passes = 1 if resident else n_row      # weights re-streamed per row tile
    cost = pl.CostEstimate(
        flops=4 * M_pad * C * H,                  # two matmuls, 2*M*C*H each
        transcendentals=M_pad * H,                # one tanh per hidden activation
        bytes_accessed=(nbytes(x2d) + M_pad * C * out_bytes
                        + weight_passes * (nbytes(w1c) + nbytes(w2c))
                        + nbytes(b1_2d) + nbytes(b2_2d)),
    )

    vmem_need = _vmem_estimate(tm, th, C, in_bytes, out_bytes, fused=resident)
    vmem_limit = int(min(max(vmem_need + (2 << 20), 32 << 20), vmem_cap_bytes))

    if resident:
        grid_spec = pltpu.PrefetchScalarGridSpec(
            num_scalar_prefetch=0,
            grid=(n_row,),
            in_specs=[
                pl.BlockSpec((tm, C), lambda i: (i, 0)),   # x row tile
                pl.BlockSpec((C, H), lambda i: (0, 0)),    # W1, resident
                pl.BlockSpec((1, H), lambda i: (0, 0)),    # b1, resident
                pl.BlockSpec((H, C), lambda i: (0, 0)),    # W2, resident
                pl.BlockSpec((1, C), lambda i: (0, 0)),    # b2, resident
            ],
            out_specs=pl.BlockSpec((tm, C), lambda i: (i, 0)),
        )
        kernel = mlp_kernel_resident
        semantics = ("parallel",)
    else:
        grid_spec = pltpu.PrefetchScalarGridSpec(
            num_scalar_prefetch=0,
            grid=(n_row, n_hid),                  # rows (parallel), hidden (reduction)
            in_specs=[
                pl.BlockSpec((tm, C), lambda i, k: (i, 0)),   # x row tile
                pl.BlockSpec((C, th), lambda i, k: (0, k)),   # W1 hidden tile
                pl.BlockSpec((1, th), lambda i, k: (0, k)),   # b1 hidden tile
                pl.BlockSpec((th, C), lambda i, k: (k, 0)),   # W2 hidden tile
                pl.BlockSpec((1, C), lambda i, k: (0, 0)),    # b2 (added once)
            ],
            out_specs=pl.BlockSpec((tm, C), lambda i, k: (i, 0)),
            scratch_shapes=[pltpu.VMEM((tm, C), jnp.float32)],
        )
        kernel = mlp_kernel_tiled
        semantics = ("parallel", "arbitrary")

    out2d = pl.pallas_call(
        kernel,
        out_shape=jax.ShapeDtypeStruct((M_pad, C), out_dtype),
        grid_spec=grid_spec,
        compiler_params=pltpu.CompilerParams(
            dimension_semantics=semantics,
            vmem_limit_bytes=vmem_limit),
        cost_estimate=cost,
    )(x2d, w1c, b1_2d, w2c, b2_2d)

    return out2d[:M].reshape(B, T, C)


# -----------------------------------------------------------------------------
# Reference / init / demo
# -----------------------------------------------------------------------------

def init_mlp_params(key, n_embd, dtype=jnp.float32):
    """Deterministic init mimicking nn.Linear defaults (uniform +-1/sqrt(fan_in))."""
    hidden = 4 * n_embd
    k1, k2, k3, k4 = jax.random.split(key, 4)
    bound1 = 1.0 / math.sqrt(n_embd)
    bound2 = 1.0 / math.sqrt(hidden)
    w1 = jax.random.uniform(k1, (n_embd, hidden), dtype, -bound1, bound1)
    b1 = jax.random.uniform(k2, (hidden,), dtype, -bound1, bound1)
    w2 = jax.random.uniform(k3, (hidden, n_embd), dtype, -bound2, bound2)
    b2 = jax.random.uniform(k4, (n_embd,), dtype, -bound2, bound2)
    return w1, b1, w2, b2


def mlp_reference(x, w1, b1, w2, b2):
    h = x @ w1 + b1
    c = 0.7978845608028654
    h = 0.5 * h * (1.0 + jnp.tanh(c * (h + 0.044715 * h ** 3)))
    return h @ w2 + b2


if __name__ == "__main__":
    N_EMBD = 32  # small GPT-2-like config (H = 128)
    key = jax.random.PRNGKey(0)
    kx, kp, kx2 = jax.random.split(key, 3)
    w1, b1, w2, b2 = init_mlp_params(kp, N_EMBD)

    # Case 1: default bf16 MXU path, resident-weight kernel.
    B, T = 2, 8
    x = jax.random.normal(kx, (B, T, N_EMBD), dtype=jnp.float32)
    out = jax.block_until_ready(mlp_forward(x, w1, b1, w2, b2))
    ref = mlp_reference(x, w1, b1, w2, b2)
    assert out.shape == (B, T, N_EMBD)
    assert jnp.allclose(out, ref, atol=6e-2, rtol=5e-2)

    # Case 2: f32 compute path (tight tolerance), M not divisible by 8
    # (exercises the row-padding path).
    B2, T2 = 2, 7
    x2 = jax.random.normal(kx2, (B2, T2, N_EMBD), dtype=jnp.float32)
    out2 = jax.block_until_ready(
        mlp_forward(x2, w1, b1, w2, b2, compute_dtype=jnp.float32))
    ref2 = mlp_reference(x2, w1, b1, w2, b2)
    assert out2.shape == (B2, T2, N_EMBD)
    assert jnp.allclose(out2, ref2, atol=2e-5, rtol=2e-5)

    # Case 3: force the hidden-tiled (accumulator) path to keep it exercised.
    out3 = jax.block_until_ready(
        mlp_forward(x, w1, b1, w2, b2, compute_dtype=jnp.float32,
                    prefer_resident=False))
    assert jnp.allclose(out3, ref, atol=2e-5, rtol=2e-5)

    print("KERNEL_OK")
</pallas_src>

<mosaic_0001>
module attributes {stable_mosaic.version = 11 : i64} {
  func.func @mlp_kernel_resident(%arg0: i32, %arg1: memref<256x32xbf16, #tpu.memory_space<vmem>>, %arg2: memref<32x128xbf16, #tpu.memory_space<vmem>>, %arg3: memref<1x128xf32, #tpu.memory_space<vmem>>, %arg4: memref<128x32xbf16, #tpu.memory_space<vmem>>, %arg5: memref<1x32xf32, #tpu.memory_space<vmem>>, %arg6: memref<256x32xf32, #tpu.memory_space<vmem>>) attributes {dimension_semantics = [#tpu.dimension_semantics<parallel>], iteration_bounds = array<i64: 1>, scalar_prefetch = 0 : i64, scratch_operands = 0 : i64, tpu.core_type = #tpu.core_type<tc>, window_params = [{transform_indices = @transform_0, window_bounds = array<i64: 256, 32>}, {pipeline_mode = #tpu.pipeline_mode<synchronous>, transform_indices = @transform_1, window_bounds = array<i64: 32, 128>}, {pipeline_mode = #tpu.pipeline_mode<synchronous>, transform_indices = @transform_2, window_bounds = array<i64: 1, 128>}, {pipeline_mode = #tpu.pipeline_mode<synchronous>, transform_indices = @transform_3, window_bounds = array<i64: 128, 32>}, {pipeline_mode = #tpu.pipeline_mode<synchronous>, transform_indices = @transform_4, window_bounds = array<i64: 1, 32>}, {transform_indices = @transform_5, window_bounds = array<i64: 256, 32>}]} {
    %c0 = arith.constant 0 : index
    %c0_0 = arith.constant 0 : index
    %0 = vector.load %arg1[%c0, %c0_0] : memref<256x32xbf16, #tpu.memory_space<vmem>>, vector<256x32xbf16>
    %c0_1 = arith.constant 0 : index
    %c0_2 = arith.constant 0 : index
    %1 = vector.load %arg2[%c0_1, %c0_2] : memref<32x128xbf16, #tpu.memory_space<vmem>>, vector<32x128xbf16>
    %cst = arith.constant dense<0.000000e+00> : vector<256x128xf32>
    %2 = tpu.matmul %0, %1, %cst {dimension_numbers = #tpu.dot_dimension_numbers<[1], [0], [0], [1], [0, 0, 1, 1], [], []>} : vector<256x32xbf16>, vector<32x128xbf16>, vector<256x128xf32> -> vector<256x128xf32>
    %c0_3 = arith.constant 0 : index
    %c0_4 = arith.constant 0 : index
    %3 = vector.load %arg3[%c0_3, %c0_4] : memref<1x128xf32, #tpu.memory_space<vmem>>, vector<1x128xf32>
    %4 = vector.broadcast %3 : vector<1x128xf32> to vector<256x128xf32>
    %5 = arith.addf %2, %4 : vector<256x128xf32>
    %6 = arith.mulf %5, %5 : vector<256x128xf32>
    %cst_5 = arith.constant 0.0356774069 : f32
    %7 = vector.broadcast %cst_5 : f32 to vector<256x128xf32>
    %8 = arith.mulf %7, %6 : vector<256x128xf32>
    %cst_6 = arith.constant 0.797884583 : f32
    %9 = vector.broadcast %cst_6 : f32 to vector<256x128xf32>
    %10 = arith.addf %9, %8 : vector<256x128xf32>
    %11 = arith.mulf %5, %10 : vector<256x128xf32>
    %cst_7 = arith.constant 5.000000e-01 : f32
    %12 = vector.broadcast %cst_7 : f32 to vector<256x128xf32>
    %13 = arith.mulf %12, %5 : vector<256x128xf32>
    %14 = math.tanh %11 : vector<256x128xf32>
    %cst_8 = arith.constant 1.000000e+00 : f32
    %15 = vector.broadcast %cst_8 : f32 to vector<256x128xf32>
    %16 = arith.addf %15, %14 : vector<256x128xf32>
    %17 = arith.mulf %13, %16 : vector<256x128xf32>
    %18 = arith.truncf %17 : vector<256x128xf32> to vector<256x128xbf16>
    %c0_9 = arith.constant 0 : index
    %c0_10 = arith.constant 0 : index
    %19 = vector.load %arg4[%c0_9, %c0_10] : memref<128x32xbf16, #tpu.memory_space<vmem>>, vector<128x32xbf16>
    %cst_11 = arith.constant dense<0.000000e+00> : vector<256x32xf32>
    %20 = tpu.matmul %18, %19, %cst_11 {dimension_numbers = #tpu.dot_dimension_numbers<[1], [0], [0], [1], [0, 0, 1, 1], [], []>} : vector<256x128xbf16>, vector<128x32xbf16>, vector<256x32xf32> -> vector<256x32xf32>
    %c0_12 = arith.constant 0 : index
    %c0_13 = arith.constant 0 : index
    %21 = vector.load %arg5[%c0_12, %c0_13] : memref<1x32xf32, #tpu.memory_space<vmem>>, vector<1x32xf32>
    %22 = vector.broadcast %21 : vector<1x32xf32> to vector<256x32xf32>
    %23 = arith.addf %20, %22 : vector<256x32xf32>
    %c0_14 = arith.constant 0 : index
    %c0_15 = arith.constant 0 : index
    %24 = vector.load %arg6[%c0_14, %c0_15] : memref<256x32xf32, #tpu.memory_space<vmem>>, vector<256x32xf32>
    tpu.vector_store %arg6[%c0_14, %c0_15], %23 {strides = array<i32>} : memref<256x32xf32, #tpu.memory_space<vmem>>, vector<256x32xf32>,
    return
  }
  func.func @transform_0(%arg0: i32) -> (i32, i32) {
    %c0_i32 = arith.constant 0 : i32
    %c0_i32_0 = arith.constant 0 : i32
    return %arg0, %c0_i32 : i32, i32
  }
  func.func @transform_1(%arg0: i32) -> (i32, i32) {
    %c0_i32 = arith.constant 0 : i32
    %c0_i32_0 = arith.constant 0 : i32
    %c0_i32_1 = arith.constant 0 : i32
    return %c0_i32, %c0_i32_0 : i32, i32
  }
  func.func @transform_2(%arg0: i32) -> (i32, i32) {
    %c0_i32 = arith.constant 0 : i32
    %c0_i32_0 = arith.constant 0 : i32
    %c0_i32_1 = arith.constant 0 : i32
    return %c0_i32, %c0_i32_0 : i32, i32
  }
  func.func @transform_3(%arg0: i32) -> (i32, i32) {
    %c0_i32 = arith.constant 0 : i32
    %c0_i32_0 = arith.constant 0 : i32
    %c0_i32_1 = arith.constant 0 : i32
    return %c0_i32, %c0_i32_0 : i32, i32
  }
  func.func @transform_4(%arg0: i32) -> (i32, i32) {
    %c0_i32 = arith.constant 0 : i32
    %c0_i32_0 = arith.constant 0 : i32
    %c0_i32_1 = arith.constant 0 : i32
    return %c0_i32, %c0_i32_0 : i32, i32
  }
  func.func @transform_5(%arg0: i32) -> (i32, i32) {
    %c0_i32 = arith.constant 0 : i32
    %c0_i32_0 = arith.constant 0 : i32
    return %arg0, %c0_i32 : i32, i32
  }
}

</mosaic_0001>

<bundles_post_ra>
// kernel: tpu_custom_call.1
= control target key start
LH: loop header
LB: loop body
LE: loop exit
PB: predicated region body
PF: predicated region fallthrough
CT: control target
= control target key end

     0   :  { %vm156_vm0 = vcmask 261120   ;;  %s1631_s1 = inlined_call_operand.vmem [shape: bf16[32,128], index: 1, kind: input, shape index: {}]   ;;  %s1632_s0 = inlined_call_operand.vmem [shape: bf16[256,32], index: 0, kind: input, shape index: {}]   ;;  %s1633_s3 = inlined_call_operand.vmem [shape: bf16[128,32], index: 3, kind: input, shape index: {}]   ;;  %s1634_s2 = inlined_call_operand.vmem [shape: f32[1,128], index: 2, kind: input, shape index: {}]   ;;  %s1635_s4 = inlined_call_operand.vmem [shape: f32[1,32], index: 4, kind: input, shape index: {}]   ;;  %s1636_s5 = inlined_call_operand.vmem [shape: f32[256,32], index: 5, kind: output, shape index: {}]  }
   0x1   :  { %v1092_v0 = vld [vmem:[%s1631_s1] sm:$0xff]   ;;  %v1093_v1 = vld [vmem:[%s1631_s1 + $0x8] sm:$0xff]   ;;  %v1096_v4 = vld [vmem:[%s1632_s0 + $0x10] sm:$0xff]  }
   0x2   :  { %992 = vmatprep.subr.bf16.mxu0 %v1092_v0  ;;  %v1094_v2 = vld [vmem:[%s1632_s0] sm:$0xff]   ;;  %v1095_v3 = vld [vmem:[%s1632_s0 + $0x8] sm:$0xff]   ;;  %v1097_v5 = vld [vmem:[%s1632_s0 + $0x18] sm:$0xff]  }
   0x3   :  { %993 = vmatpush3.bf16.msra.mxu0 %v1092_v0  ;;  %996 = vmatprep.mubr.msk.bf16.mxu0 %vm156_vm0, %v1094_v2  ;;  %v1098_v6 = vld [vmem:[%s1632_s0 + $0x20] sm:$0xff]   ;;  %v1099_v7 = vld [vmem:[%s1632_s0 + $0x28] sm:$0xff]   ;;  %v1100_v8 = vld [vmem:[%s1632_s0 + $0x30] sm:$0xff]  }
   0x4   :  { %994 = vmatprep.subr.bf16.mxu0 %v1093_v1  ;;  %v1101_v9 = vld [vmem:[%s1632_s0 + $0x38] sm:$0xff]   ;;  %v1102_v10 = vld [vmem:[%s1632_s0 + $0x40] sm:$0xff]   ;;  %v1103_v11 = vld [vmem:[%s1632_s0 + $0x48] sm:$0xff]  }
   0x5   :  { %v1104_v12 = vld [vmem:[%s1632_s0 + $0x50] sm:$0xff]   ;;  %v1105_v13 = vld [vmem:[%s1632_s0 + $0x58] sm:$0xff]   ;;  %v1106_v14 = vld [vmem:[%s1632_s0 + $0x60] sm:$0xff]  }
   0x6   :  { %v1107_v15 = vld [vmem:[%s1632_s0 + $0x68] sm:$0xff]   ;;  %v1108_v16 = vld [vmem:[%s1632_s0 + $0x70] sm:$0xff]   ;;  %v1109_v17 = vld [vmem:[%s1632_s0 + $0x78] sm:$0xff]  }
   0x7   :  { %995 = vmatpush3.bf16.msra.mxu0 %v1093_v1  ;;  %v1110_v18 = vld [vmem:[%s1633_s3] sm:$0xff]   ;;  %v1111_v19 = vld [vmem:[%s1633_s3 + $0x8] sm:$0xff]   ;;  %v1112_v20 = vld [vmem:[%s1633_s3 + $0x10] sm:$0xff]  }
   0x8   :  { %1028 = vmatprep.subr.bf16.mxu0 %v1110_v18  ;;  %1076 = vmatprep.subr.bf16.mxu1 %v1110_v18  ;;  %v1113_v21 = vld [vmem:[%s1633_s3 + $0x18] sm:$0xff]   ;;  %v1114_v22 = vld [vmem:[%s1633_s3 + $0x20] sm:$0xff]   ;;  %v1115_v23 = vld [vmem:[%s1633_s3 + $0x28] sm:$0xff]  }
   0x9   :  { %1084 = vmatpush3.bf16.msra.mxu1 %v1110_v18  ;;  %v1116_v24 = vld [vmem:[%s1633_s3 + $0x30] sm:$0xff]   ;;  %v1117_v25 = vld [vmem:[%s1633_s3 + $0x38] sm:$0xff]   ;;  %v1309_v26 = vld [vmem:[%s1634_s2] ss:$0 sm:$0xff] }
   0xa   :  { %997 = vmatmul.mubr.msk.bf16.vlgmr.msra.gmra.mrb[0].mxu0 %vm156_vm0, %v1095_v3  ;;  %1077 = vmatprep.subr.bf16.mxu1 %v1111_v19 }
   0xb   :  { %1000 = vmatprep.mubr.msk.bf16.mxu0 %vm156_vm0, %v1096_v4  ;;  %1029 = vmatpush3.bf16.msra.mxu0 %v1110_v18 }
   0xc   :  { %1030 = vmatprep.subr.bf16.mxu0 %v1111_v19 }
   0xd   :  { %1085 = vmatpush3.bf16.msra.mxu1 %v1111_v19 }
   0xe   :  { %1078 = vmatprep.subr.bf16.mxu1 %v1112_v20 }
   0xf   :  { %1031 = vmatpush3.bf16.msra.mxu0 %v1111_v19 }
  0x10   :  { %1032 = vmatprep.subr.bf16.mxu0 %v1112_v20 }
  0x11   :  { %1086 = vmatpush3.bf16.msra.mxu1 %v1112_v20 }
  0x12   :  { %1001 = vmatmul.mubr.msk.bf16.gmra.mrb[4].mxu0 %vm156_vm0, %v1097_v5  ;;  %1079 = vmatprep.subr.bf16.mxu1 %v1113_v21 }
  0x13   :  { %1004 = vmatprep.mubr.msk.bf16.mxu0 %vm156_vm0, %v1098_v6  ;;  %1033 = vmatpush3.bf16.msra.mxu0 %v1112_v20 }
  0x14   :  { %1034 = vmatprep.subr.bf16.mxu0 %v1113_v21 }
  0x15   :  { %1087 = vmatpush3.bf16.msra.mxu1 %v1113_v21 }
  0x16   :  { %1080 = vmatprep.subr.bf16.mxu1 %v1114_v22 }
  0x17   :  { %1035 = vmatpush3.bf16.msra.mxu0 %v1113_v21 }
  0x18   :  { %1036 = vmatprep.subr.bf16.mxu0 %v1114_v22 }
  0x19   :  { %1088 = vmatpush3.bf16.msra.mxu1 %v1114_v22 }
  0x1a   :  { %1005 = vmatmul.mubr.msk.bf16.gmra.mrb[8].mxu0 %vm156_vm0, %v1099_v7  ;;  %1081 = vmatprep.subr.bf16.mxu1 %v1115_v23 }
  0x1b   :  { %1008 = vmatprep.mubr.msk.bf16.mxu0 %vm156_vm0, %v1100_v8  ;;  %1037 = vmatpush3.bf16.msra.mxu0 %v1114_v22 }
  0x1c   :  { %1038 = vmatprep.subr.bf16.mxu0 %v1115_v23 }
  0x1d   :  { %1089 = vmatpush3.bf16.msra.mxu1 %v1115_v23 }
  0x1e   :  { %1082 = vmatprep.subr.bf16.mxu1 %v1116_v24 }
  0x1f   :  { %1039 = vmatpush3.bf16.msra.mxu0 %v1115_v23 }
  0x20   :  { %1040 = vmatprep.subr.bf16.mxu0 %v1116_v24 }
  0x21   :  { %1090 = vmatpush3.bf16.msra.mxu1 %v1116_v24 }
  0x22   :  { %1009 = vmatmul.mubr.msk.bf16.gmra.mrb[12].mxu0 %vm156_vm0, %v1101_v9  ;;  %1083 = vmatprep.subr.bf16.mxu1 %v1117_v25 }
  0x23   :  { %1012 = vmatprep.mubr.msk.bf16.mxu0 %vm156_vm0, %v1102_v10  ;;  %1041 = vmatpush3.bf16.msra.mxu0 %v1116_v24 }
  0x24   :  { %1042 = vmatprep.subr.bf16.mxu0 %v1117_v25 }
  0x25   :  { %1091 = vmatpush3.bf16.msra.mxu1 %v1117_v25 }
  0x27   :  { %1043 = vmatpush3.bf16.msra.mxu0 %v1117_v25 }
  0x2a   :  { %1013 = vmatmul.mubr.msk.bf16.gmra.mrb[16].mxu0 %vm156_vm0, %v1103_v11 }
  0x2b   :  { %1016 = vmatprep.mubr.msk.bf16.mxu0 %vm156_vm0, %v1104_v12 }
  0x32   :  { %1017 = vmatmul.mubr.msk.bf16.gmra.mrb[20].mxu0 %vm156_vm0, %v1105_v13 }
  0x33   :  { %1020 = vmatprep.mubr.msk.bf16.mxu0 %vm156_vm0, %v1106_v14 }
  0x3a   :  { %1021 = vmatmul.mubr.msk.bf16.gmra.mrb[24].mxu0 %vm156_vm0, %v1107_v15 }
  0x3b   :  { %1024 = vmatprep.mubr.msk.bf16.mxu0 %vm156_vm0, %v1108_v16 }
  0x42   :  { %1025 = vmatmul.mubr.msk.bf16.gmra.mrb[28].mxu0 %vm156_vm0, %v1109_v17 }
  0xdd   :  { %v998_v27 = vpop.f32.mrb[0].mxu0 }
  0xde   :  { %v248_v28 = vadd.f32 %v998_v27, %v1309_v26  ;;  %v239_v29 = vpop.f32.mrb[1].mxu0 }
  0xdf   :  { %v240_v30 = vadd.f32 %v1309_v26, %v239_v29  ;;  %v999_v31 = vpop.f32.mrb[2].mxu0 }
  0xe0   :  { %v368_v32 = vmul.f32 %v248_v28, %v248_v28  ;;  %v251_v33 = vadd.f32 %v999_v31, %v1309_v26  ;;  %v242_v34 = vpop.f32.mrb[3].mxu0  ;;  %v496_v1 = vmul.f32 0.5, %v248_v28 }
  0xe1   :  { %v366_v35 = vmul.f32 %v240_v30, %v240_v30  ;;  %v243_v36 = vadd.f32 %v1309_v26, %v242_v34  ;;  %v1319_v6 = vmul.f32 0.5, %v240_v30 }
  0xe2   :  { %v400_v37 = vmul.f32 0.035677407, %v368_v32  ;;  %v369_v38 = vmul.f32 %v251_v33, %v251_v33  ;;  %v497_v7 = vmul.f32 0.5, %v251_v33 }
  0xe3   :  { %v398_v39 = vmul.f32 0.035677407, %v366_v35  ;;  %v367_v40 = vmul.f32 %v243_v36, %v243_v36  ;;  %v1322_v11 = vmul.f32 0.5, %v243_v36 }
  0xe4   :  { %v432_v41 = vadd.f32 0.7978846, %v400_v37  ;;  %v401_v42 = vmul.f32 0.035677407, %v369_v38 }
  0xe5   :  { %v399_v43 = vmul.f32 0.035677407, %v367_v40  ;;  %v1002_v44 = vpop.f32.mrb[4].mxu0  ;;  %v430_v49 = vadd.f32 0.7978846, %v398_v39 }
  0xe6   :  { %v464_v45 = vmul.f32 %v432_v41, %v248_v28  ;;  %v433_v46 = vadd.f32 0.7978846, %v401_v42  ;;  %v264_v47 = vadd.f32 %v1002_v44, %v1309_v26  ;;  %v255_v48 = vpop.f32.mrb[5].mxu0 }
  0xe7   :  { %v256_v50 = vadd.f32 %v1309_v26, %v255_v48  ;;  %v1003_v51 = vpop.f32.mrb[6].mxu0  ;;  %v431_v55 = vadd.f32 0.7978846, %v399_v43  ;;  %v462_v60 = vmul.f32 %v430_v49, %v240_v30 }
  0xe8   :  { %1118 = vtanh.f32 %v464_v45  ;;  %v465_v52 = vmul.f32 %v433_v46, %v251_v33  ;;  %v372_v53 = vmul.f32 %v264_v47, %v264_v47  ;;  %v258_v54 = vpop.f32.mrb[7].mxu0  ;;  %v267_v57 = vadd.f32 %v1003_v51, %v1309_v26 }
  0xe9   :  { %v370_v56 = vmul.f32 %v256_v50, %v256_v50  ;;  %v259_v59 = vadd.f32 %v1309_v26, %v258_v54  ;;  %v463_v2 = vmul.f32 %v431_v55, %v243_v36  ;;  %v1325_v16 = vmul.f32 0.5, %v264_v47 }
  0xea   :  { %1120 = vtanh.f32 %v465_v52  ;;  %v404_v58 = vmul.f32 0.035677407, %v372_v53  ;;  %v373_v62 = vmul.f32 %v267_v57, %v267_v57  ;;  %v1327_v22 = vmul.f32 0.5, %v256_v50 }
  0xeb   :  { %v402_v61 = vmul.f32 0.035677407, %v370_v56  ;;  %v371_v0 = vmul.f32 %v259_v59, %v259_v59  ;;  %1122 = vtanh.f32 %v462_v60  ;;  %v1331_v30 = vmul.f32 0.5, %v267_v57 }
  0xec   :  { %v436_v63 = vadd.f32 0.7978846, %v404_v58  ;;  %v405_v4 = vmul.f32 0.035677407, %v373_v62  ;;  %1124 = vtanh.f32 %v463_v2  ;;  %v1333_v32 = vmul.f32 0.5, %v259_v59 }
  0xed   :  { %v434_v3 = vadd.f32 0.7978846, %v402_v61  ;;  %v1006_v5 = vpop.f32.mrb[8].mxu0  ;;  %v403_v8 = vmul.f32 0.035677407, %v371_v0 }
  0xee   :  { %v280_v9 = vadd.f32 %v1006_v5, %v1309_v26  ;;  %v271_v10 = vpop.f32.mrb[9].mxu0  ;;  %v437_v12 = vadd.f32 0.7978846, %v405_v4  ;;  %v468_v15 = vmul.f32 %v436_v63, %v264_v47 }
  0xef   :  { %v272_v13 = vadd.f32 %v1309_v26, %v271_v10  ;;  %v1007_v14 = vpop.f32.mrb[10].mxu0  ;;  %v435_v17 = vadd.f32 0.7978846, %v403_v8  ;;  %v466_v20 = vmul.f32 %v434_v3, %v256_v50 }
  0xf0   :  { %v376_v18 = vmul.f32 %v280_v9, %v280_v9  ;;  %v274_v19 = vpop.f32.mrb[11].mxu0  ;;  %v469_v24 = vmul.f32 %v437_v12, %v267_v57  ;;  %v283_v27 = vadd.f32 %v1007_v14, %v1309_v26  ;;  %1126 = vtanh.f32 %v468_v15 }
  0xf1   :  { %v374_v21 = vmul.f32 %v272_v13, %v272_v13  ;;  %v275_v28 = vadd.f32 %v1309_v26, %v274_v19  ;;  %v467_v34 = vmul.f32 %v435_v17, %v259_v59  ;;  %1128 = vtanh.f32 %v466_v20 }
  0xf2   :  { %v1119_v23 = vpop.eup %1118  ;;  %v408_v25 = vmul.f32 0.035677407, %v376_v18  ;;  %v377_v36 = vmul.f32 %v283_v27, %v283_v27  ;;  %1130 = vtanh.f32 %v469_v24  ;;  %v1341_v50 = vmul.f32 0.5, %v280_v9 }
  0xf3   :  { %v560_v29 = vadd.f32 1.0, %v1119_v23  ;;  %v406_v31 = vmul.f32 0.035677407, %v374_v21  ;;  %v375_v39 = vmul.f32 %v275_v28, %v275_v28  ;;  %1132 = vtanh.f32 %v467_v34 }
  0xf4   :  { %v1121_v33 = vpop.eup %1120  ;;  %v440_v35 = vadd.f32 0.7978846, %v408_v25  ;;  %v409_v42 = vmul.f32 0.035677407, %v377_v36  ;;  %v1343_v51 = vmul.f32 0.5, %v272_v13  ;;  %v1347_v59 = vmul.f32 0.5, %v283_v27 }
  0xf5   :  { %v561_v37 = vadd.f32 1.0, %v1121_v33  ;;  %v438_v38 = vadd.f32 0.7978846, %v406_v31  ;;  %v1010_v40 = vpop.f32.mrb[12].mxu0  ;;  %v1335_v41 = vmul.f32 %v560_v29, %v496_v1  ;;  %v407_v47 = vmul.f32 0.035677407, %v375_v39  ;;  %v1123_v54 = vpop.eup %1122 }
  0xf6   :  { %v296_v43 = vadd.f32 %v1010_v40, %v1309_v26  ;;  %v287_v44 = vpop.f32.mrb[13].mxu0  ;;  %v472_v46 = vmul.f32 %v440_v35, %v280_v9  ;;  %v441_v57 = vadd.f32 0.7978846, %v409_v42  ;;  %v1125_v63 = vpop.eup %1124  ;;  %v1350_v0 = vmul.f32 0.5, %v275_v28 }
  0xf7   :  { %v1338_v45 = vmul.f32 %v561_v37, %v497_v7  ;;  %v288_v48 = vadd.f32 %v1309_v26, %v287_v44  ;;  %v1011_v49 = vpop.f32.mrb[14].mxu0  ;;  %v470_v56 = vmul.f32 %v438_v38, %v272_v13  ;;  %v439_v60 = vadd.f32 0.7978846, %v407_v47 }
  0xf8   :  { %v380_v52 = vmul.f32 %v296_v43, %v296_v43  ;;  %v290_v53 = vpop.f32.mrb[15].mxu0  ;;  %v299_v62 = vadd.f32 %v1011_v49, %v1309_v26  ;;  %1134 = vtanh.f32 %v472_v46  ;;  %v1353_v4 = vmul.f32 0.5, %v296_v43 }
  0xf9   :  { %v623_v55 = vpack.c.bf16 %v1338_v45, %v1335_v41  ;;  %v378_v58 = vmul.f32 %v288_v48, %v288_v48  ;;  %v291_v2 = vadd.f32 %v1309_v26, %v290_v53  ;;  %v558_v7 = vadd.f32 1.0, %v1123_v54 }
  0xfa   :  { %v412_v61 = vmul.f32 0.035677407, %v380_v52  ;;  %v381_v5 = vmul.f32 %v299_v62, %v299_v62  ;;  %1136 = vtanh.f32 %v470_v56  ;;  %v473_v8 = vmul.f32 %v441_v57, %v283_v27  ;;  %v1127_v13 = vpop.eup %1126 }
  0xfb   :  { %v410_v1 = vmul.f32 0.035677407, %v378_v58  ;;  %v379_v10 = vmul.f32 %v291_v2, %v291_v2  ;;  %v471_v14 = vmul.f32 %v439_v60, %v275_v28  ;;  %v1355_v15 = vmul.f32 0.5, %v288_v48  ;;  %v1129_v20 = vpop.eup %1128 }
  0xfc   :  { %v444_v3 = vadd.f32 0.7978846, %v412_v61  ;;  %v413_v17 = vmul.f32 0.035677407, %v381_v5  ;;  %v559_v18 = vadd.f32 1.0, %v1125_v63  ;;  %v1131_v31 = vpop.eup %1130  ;;  %v590_v33 = vmul.f32 %v558_v7, %v1319_v6 }
  0xfd   :  { %v442_v9 = vadd.f32 0.7978846, %v410_v1  ;;  %v1014_v12 = vpop.f32.mrb[16].mxu0  ;;  %v411_v23 = vmul.f32 0.035677407, %v379_v10  ;;  %1138 = vtanh.f32 %v473_v8  ;;  %v1362_v37 = vmul.f32 0.5, %v299_v62  ;;  %v1133_v39 = vpop.eup %1132 }
  0xfe   :  { %v303_v19 = vpop.f32.mrb[17].mxu0  ;;  %v476_v21 = vmul.f32 %v444_v3, %v296_v43  ;;  %v312_v24 = vadd.f32 %v1014_v12, %v1309_v26  ;;  %v591_v34 = vmul.f32 %v559_v18, %v1322_v11  ;;  %v445_v36 = vadd.f32 0.7978846, %v413_v17 }
  0xff   :  { %v304_v25 = vadd.f32 %v1309_v26, %v303_v19  ;;  %v1015_v29 = vpop.f32.mrb[18].mxu0  ;;  %v474_v27 = vmul.f32 %v442_v9, %v288_v48  ;;  %1140 = vtanh.f32 %v471_v14  ;;  %v443_v40 = vadd.f32 0.7978846, %v411_v23 }
 0x100   :  { %v315_v28 = vadd.f32 %v1015_v29, %v1309_v26  ;;  %v306_v35 = vpop.f32.mrb[19].mxu0  ;;  %v384_v38 = vmul.f32 %v312_v24, %v312_v24  ;;  %v622_v41 = vpack.c.bf16 %v591_v34, %v590_v33  ;;  %1142 = vtanh.f32 %v476_v21 }
 0x101   :  { %v382_v42 = vmul.f32 %v304_v25, %v304_v25  ;;  %v1364_v43 = vmul.f32 0.5, %v291_v2  ;;  %1144 = vtanh.f32 %v474_v27  ;;  %v307_v45 = vadd.f32 %v1309_v26, %v306_v35 }
 0x102   :  { %v416_v44 = vmul.f32 0.035677407, %v384_v38  ;;  %v385_v6 = vmul.f32 %v315_v28, %v315_v28  ;;  %1044 = vmatprep.mubr.bf16.mxu0 %v622_v41  ;;  %v562_v46 = vadd.f32 1.0, %v1129_v20  ;;  %v1367_v47 = vpop.eup %1134  ;;  %v477_v48 = vmul.f32 %v445_v36, %v299_v62 }
 0x103   :  { %v414_v11 = vmul.f32 0.035677407, %v382_v42  ;;  %1045 = vmatmul.mubr.bf16.vlgmr.msra.gmra.mrb[32].mxu0 %v623_v55  ;;  %v563_v53 = vadd.f32 1.0, %v1133_v39  ;;  %v475_v56 = vmul.f32 %v443_v40, %v291_v2  ;;  %v1369_v57 = vmul.f32 0.5, %v312_v24 }
 0x104   :  { %v448_v49 = vadd.f32 0.7978846, %v416_v44  ;;  %v417_v52 = vmul.f32 0.035677407, %v385_v6  ;;  %v383_v60 = vmul.f32 %v307_v45, %v307_v45  ;;  %v1137_v63 = vpop.eup %1136  ;;  %v594_v3 = vmul.f32 %v562_v46, %v1327_v22 }
 0x105   :  { %v1018_v54 = vpop.f32.mrb[20].mxu0  ;;  %v446_v58 = vadd.f32 0.7978846, %v414_v11  ;;  %v595_v5 = vmul.f32 %v563_v53, %v1333_v32  ;;  %v1374_v8 = vmul.f32 0.5, %v304_v25  ;;  %v564_v9 = vadd.f32 1.0, %v1127_v13 }
 0x106   :  { %v319_v61 = vpop.f32.mrb[21].mxu0  ;;  %v449_v1 = vadd.f32 0.7978846, %v417_v52  ;;  %v328_v7 = vadd.f32 %v1018_v54, %v1309_v26  ;;  %v415_v55 = vmul.f32 0.035677407, %v383_v60  ;;  %v565_v10 = vadd.f32 1.0, %v1131_v31 }
 0x107   :  { %v1019_v62 = vpop.f32.mrb[22].mxu0  ;;  %1146 = vtanh.f32 %v477_v48  ;;  %v480_v12 = vmul.f32 %v448_v49, %v312_v24  ;;  %v624_v14 = vpack.c.bf16 %v595_v5, %v594_v3  ;;  %v478_v18 = vmul.f32 %v446_v58, %v304_v25  ;;  %v1139_v22 = vpop.eup %1138 }
 0x108   :  { %v322_v2 = vpop.f32.mrb[23].mxu0  ;;  %v388_v17 = vmul.f32 %v328_v7, %v328_v7  ;;  %1148 = vtanh.f32 %v475_v56  ;;  %v481_v19 = vmul.f32 %v449_v1, %v315_v28  ;;  %v1376_v20 = vmul.f32 0.5, %v315_v28 }
 0x109   :  { %1048 = vmatprep.mubr.bf16.mxu1 %v624_v14  ;;  %v596_v21 = vmul.f32 %v564_v9, %v1325_v16  ;;  %v597_v23 = vmul.f32 %v565_v10, %v1331_v30  ;;  %v320_v13 = vadd.f32 %v1309_v26, %v319_v61  ;;  %v1141_v29 = vpop.eup %1140  ;;  %v447_v31 = vadd.f32 0.7978846, %v415_v55 }
 0x10a   :  { %v420_v32 = vmul.f32 0.035677407, %v388_v17  ;;  %v1381_v27 = vmul.f32 0.5, %v307_v45  ;;  %v331_v24 = vadd.f32 %v1019_v62, %v1309_v26  ;;  %v1385_v25 = vadd.f32 %v1309_v26, %v322_v2  ;;  %v1387_v33 = vpop.eup %1142 }
 0x10b   :  { %1150 = vtanh.f32 %v480_v12  ;;  %v625_v34 = vpack.c.bf16 %v597_v23, %v596_v21  ;;  %v386_v28 = vmul.f32 %v320_v13, %v320_v13  ;;  %v566_v35 = vadd.f32 1.0, %v1137_v63  ;;  %v1145_v36 = vpop.eup %1144 }
 0x10c   :  { %1152 = vtanh.f32 %v478_v18  ;;  %v452_v30 = vadd.f32 0.7978846, %v420_v32  ;;  %v389_v38 = vmul.f32 %v331_v24, %v331_v24  ;;  %v387_v39 = vmul.f32 %v1385_v25, %v1385_v25 }
 0x10d   :  { %v1022_v16 = vpop.f32.mrb[24].mxu0  ;;  %1154 = vtanh.f32 %v481_v19  ;;  %v1391_v41 = vmul.f32 0.5, %v328_v7  ;;  %1049 = vmatmul.mubr.bf16.vlgmr.msra.gmra.mrb[0].mxu1 %v625_v34  ;;  %v418_v42 = vmul.f32 0.035677407, %v386_v28  ;;  %v567_v44 = vadd.f32 1.0, %v1141_v29 }
 0x10e   :  { %v335_v40 = vpop.f32.mrb[25].mxu0  ;;  %v479_v11 = vmul.f32 %v447_v31, %v307_v45  ;;  %v421_v46 = vmul.f32 0.035677407, %v389_v38  ;;  %v419_v48 = vmul.f32 0.035677407, %v387_v39  ;;  %v1394_v49 = vadd.f32 %v1022_v16, %v1309_v26 }
 0x10f   :  { %v1023_v6 = vpop.f32.mrb[26].mxu0  ;;  %v450_v53 = vadd.f32 0.7978846, %v418_v42  ;;  %v598_v54 = vmul.f32 %v566_v35, %v1343_v51  ;;  %v599_v56 = vmul.f32 %v567_v44, %v1350_v0  ;;  %v568_v58 = vadd.f32 1.0, %v1367_v47 }
 0x110   :  { %v338_v52 = vpop.f32.mrb[27].mxu0  ;;  %v484_v60 = vmul.f32 %v452_v30, %v328_v7  ;;  %v453_v61 = vadd.f32 0.7978846, %v421_v46  ;;  %v451_v63 = vadd.f32 0.7978846, %v419_v48  ;;  %v392_v1 = vmul.f32 %v1394_v49, %v1394_v49 }
 0x111   :  { %v1147_v45 = vpop.eup %1146  ;;  %v482_v3 = vmul.f32 %v450_v53, %v320_v13  ;;  %v1401_v5 = vmul.f32 0.5, %v320_v13  ;;  %v626_v62 = vpack.c.bf16 %v599_v56, %v598_v54  ;;  %v569_v55 = vadd.f32 1.0, %v1139_v22 }
 0x112   :  { %v1149_v9 = vpop.eup %1148  ;;  %1156 = vtanh.f32 %v479_v11  ;;  %v483_v51 = vmul.f32 %v451_v63, %v1385_v25  ;;  %v424_v10 = vmul.f32 0.035677407, %v392_v1  ;;  %v1405_v0 = vadd.f32 %v1309_v26, %v335_v40 }
 0x113   :  { %1052 = vmatprep.mubr.bf16.mxu1 %v626_v62  ;;  %v600_v47 = vmul.f32 %v568_v58, %v1341_v50  ;;  %v601_v7 = vmul.f32 %v569_v55, %v1347_v59  ;;  %v347_v2 = vadd.f32 %v1023_v6, %v1309_v26  ;;  %v1411_v12 = vadd.f32 %v1309_v26, %v338_v52 }
 0x114   :  { %1158 = vtanh.f32 %v484_v60  ;;  %v485_v17 = vmul.f32 %v453_v61, %v331_v24  ;;  %v456_v18 = vadd.f32 0.7978846, %v424_v10  ;;  %v390_v19 = vmul.f32 %v1405_v0, %v1405_v0 }
 0x115   :  { %v1026_v14 = vpop.f32.mrb[28].mxu0  ;;  %v1151_v32 = vpop.eup %1150  ;;  %1160 = vtanh.f32 %v482_v3  ;;  %v1415_v21 = vmul.f32 0.5, %v331_v24  ;;  %v627_v50 = vpack.c.bf16 %v601_v7, %v600_v47  ;;  %v393_v23 = vmul.f32 %v347_v2, %v347_v2 }
 0x116   :  { %v351_v22 = vpop.f32.mrb[29].mxu0  ;;  %v1153_v13 = vpop.eup %1152  ;;  %1162 = vtanh.f32 %v483_v51  ;;  %v488_v29 = vmul.f32 %v456_v18, %v1394_v49  ;;  %v422_v31 = vmul.f32 0.035677407, %v390_v19  ;;  %v391_v34 = vmul.f32 %v1411_v12, %v1411_v12 }
 0x117   :  { %v1027_v59 = vpop.f32.mrb[30].mxu0  ;;  %v1155_v35 = vpop.eup %1154  ;;  %1053 = vmatmul.mubr.bf16.gmra.mrb[4].mxu1 %v627_v50  ;;  %v425_v16 = vmul.f32 0.035677407, %v393_v23  ;;  %v570_v30 = vadd.f32 1.0, %v1145_v36  ;;  %v571_v38 = vadd.f32 1.0, %v1149_v9  ;;  %v1421_v24 = vadd.f32 %v1026_v14, %v1309_v26 }
 0x118   :  { %v354_v28 = vpop.f32.mrb[31].mxu0  ;;  %1164 = vtanh.f32 %v485_v17  ;;  %v454_v39 = vadd.f32 0.7978846, %v422_v31  ;;  %v423_v40 = vmul.f32 0.035677407, %v391_v34  ;;  %v572_v42 = vadd.f32 1.0, %v1387_v33 }
 0x119   :  { %v457_v44 = vadd.f32 0.7978846, %v425_v16  ;;  %v602_v6 = vmul.f32 %v570_v30, %v1355_v15  ;;  %v603_v11 = vmul.f32 %v571_v38, %v1364_v43  ;;  %v396_v46 = vmul.f32 %v1421_v24, %v1421_v24 }
 0x11a   :  { %1166 = vtanh.f32 %v488_v29  ;;  %v486_v36 = vmul.f32 %v454_v39, %v1405_v0  ;;  %v455_v48 = vadd.f32 0.7978846, %v423_v40  ;;  %v573_v52 = vadd.f32 1.0, %v1147_v45 }
 0x11b   :  { %v489_v53 = vmul.f32 %v457_v44, %v347_v2  ;;  %v628_v54 = vpack.c.bf16 %v603_v11, %v602_v6  ;;  %v428_v56 = vmul.f32 0.035677407, %v396_v46  ;;  %v604_v58 = vmul.f32 %v572_v42, %v1353_v4 }
 0x11c   :  { %v1157_v60 = vpop.eup %1156  ;;  %1168 = vtanh.f32 %v486_v36  ;;  %v487_v33 = vmul.f32 %v455_v48, %v1411_v12  ;;  %v605_v15 = vmul.f32 %v573_v52, %v1362_v37  ;;  %v1433_v43 = vadd.f32 %v1309_v26, %v351_v22 }
 0x11d   :  { %1170 = vtanh.f32 %v489_v53  ;;  %1056 = vmatprep.mubr.bf16.mxu1 %v628_v54  ;;  %v460_v61 = vadd.f32 0.7978846, %v428_v56  ;;  %v1436_v63 = vadd.f32 %v1027_v59, %v1309_v26  ;;  %v1439_v1 = vadd.f32 %v1309_v26, %v354_v28 }
 0x11e   :  { %v1159_v45 = vpop.eup %1158  ;;  %v515_v4 = vmul.f32 0.5, %v1385_v25  ;;  %1172 = vtanh.f32 %v487_v33  ;;  %v629_v3 = vpack.c.bf16 %v605_v15, %v604_v58  ;;  %v394_v37 = vmul.f32 %v1433_v43, %v1433_v43 }
 0x11f   :  { %v1161_v62 = vpop.eup %1160  ;;  %v520_v55 = vmul.f32 0.5, %v1394_v49  ;;  %v492_v9 = vmul.f32 %v460_v61, %v1421_v24  ;;  %v397_v51 = vmul.f32 %v1436_v63, %v1436_v63  ;;  %v395_v26 = vmul.f32 %v1439_v1, %v1439_v1 }
 0x120   :  { %v1163_v10 = vpop.eup %1162  ;;  %v521_v47 = vmul.f32 0.5, %v347_v2  ;;  %1057 = vmatmul.mubr.bf16.gmra.mrb[8].mxu1 %v629_v3  ;;  %v426_v25 = vmul.f32 0.035677407, %v394_v37  ;;  %v574_v7 = vadd.f32 1.0, %v1153_v13  ;;  %v575_v14 = vadd.f32 1.0, %v1157_v60 }
 0x121   :  { %1174 = vtanh.f32 %v492_v9  ;;  %v429_v17 = vmul.f32 0.035677407, %v397_v51  ;;  %v427_v18 = vmul.f32 0.035677407, %v395_v26  ;;  %v576_v19 = vadd.f32 1.0, %v1151_v32 }
 0x122   :  { %v1165_v22 = vpop.eup %1164  ;;  %v458_v49 = vadd.f32 0.7978846, %v426_v25  ;;  %v606_v50 = vmul.f32 %v574_v7, %v1374_v8  ;;  %v607_v23 = vmul.f32 %v575_v14, %v1381_v27  ;;  %v577_v59 = vadd.f32 1.0, %v1155_v35 }
 0x123   :  { %v461_v29 = vadd.f32 0.7978846, %v429_v17  ;;  %v459_v31 = vadd.f32 0.7978846, %v427_v18  ;;  %v608_v34 = vmul.f32 %v576_v19, %v1369_v57  ;;  %v578_v2 = vadd.f32 1.0, %v1161_v62 }
 0x124   :  { %v1167_v28 = vpop.eup %1166  ;;  %v490_v13 = vmul.f32 %v458_v49, %v1433_v43  ;;  %v630_v16 = vpack.c.bf16 %v607_v23, %v606_v50  ;;  %v609_v30 = vmul.f32 %v577_v59, %v1376_v20  ;;  %v579_v38 = vadd.f32 1.0, %v1163_v10 }
 0x125   :  { %v493_v32 = vmul.f32 %v461_v29, %v1436_v63  ;;  %v491_v39 = vmul.f32 %v459_v31, %v1439_v1  ;;  %v610_v8 = vmul.f32 %v578_v2, %v1401_v5  ;;  %v580_v27 = vadd.f32 1.0, %v1159_v45 }
 0x126   :  { %v1169_v35 = vpop.eup %1168  ;;  %1176 = vtanh.f32 %v490_v13  ;;  %1060 = vmatprep.mubr.bf16.mxu1 %v630_v16  ;;  %v631_v40 = vpack.c.bf16 %v609_v30, %v608_v34  ;;  %v611_v57 = vmul.f32 %v579_v38, %v515_v4  ;;  %v581_v42 = vadd.f32 1.0, %v1165_v22 }
 0x127   :  { %v1171_v44 = vpop.eup %1170  ;;  %1178 = vtanh.f32 %v493_v32  ;;  %v612_v6 = vmul.f32 %v580_v27, %v1391_v41  ;;  %v582_v11 = vadd.f32 1.0, %v1169_v35  ;;  %v584_v20 = vadd.f32 1.0, %v1167_v28 }
 0x128   :  { %v1173_v46 = vpop.eup %1172  ;;  %1180 = vtanh.f32 %v491_v39  ;;  %1061 = vmatmul.mubr.bf16.gmra.mrb[12].mxu1 %v631_v40  ;;  %v632_v36 = vpack.c.bf16 %v611_v57, %v610_v8  ;;  %v613_v48 = vmul.f32 %v581_v42, %v1415_v21  ;;  %v585_v5 = vadd.f32 1.0, %v1171_v44 }
 0x129   :  { %v518_v52 = vmul.f32 0.5, %v1405_v0  ;;  %v519_v53 = vmul.f32 0.5, %v1411_v12  ;;  %v583_v54 = vadd.f32 1.0, %v1173_v46  ;;  %v616_v58 = vmul.f32 %v584_v20, %v520_v55 }
 0x12a   :  { %1064 = vmatprep.mubr.bf16.mxu1 %v632_v36  ;;  %v633_v56 = vpack.c.bf16 %v613_v48, %v612_v6  ;;  %v617_v60 = vmul.f32 %v585_v5, %v521_v47  ;;  %v524_v0 = vmul.f32 0.5, %v1421_v24  ;;  %v525_v12 = vmul.f32 0.5, %v1436_v63  ;;  %v1469_v24 = vld [vmem:[%s1635_s4] ss:$0 sm:$0xff] }
 0x12b   :  { %v1175_v33 = vpop.eup %1174  ;;  %v614_v41 = vmul.f32 %v582_v11, %v518_v52  ;;  %v615_v15 = vmul.f32 %v583_v54, %v519_v53  ;;  %v522_v55 = vmul.f32 0.5, %v1433_v43  ;;  %v523_v51 = vmul.f32 0.5, %v1439_v1 }
 0x12c   :  { %v635_v61 = vpack.c.bf16 %v617_v60, %v616_v58  ;;  %v588_v3 = vadd.f32 1.0, %v1175_v33 }
 0x12d   :  { %v634_v45 = vpack.c.bf16 %v615_v15, %v614_v41 }
 0x12e   :  { %v620_v10 = vmul.f32 %v588_v3, %v524_v0 }
 0x130   :  { %v1177_v4 = vpop.eup %1176  ;;  %1065 = vmatmul.mubr.bf16.gmra.mrb[16].mxu1 %v633_v56 }
 0x131   :  { %v1179_v37 = vpop.eup %1178  ;;  %1068 = vmatprep.mubr.bf16.mxu1 %v634_v45  ;;  %v586_v21 = vadd.f32 1.0, %v1177_v4 }
 0x132   :  { %v1181_v62 = vpop.eup %1180  ;;  %v589_v9 = vadd.f32 1.0, %v1179_v37 }
 0x133   :  { %v587_v26 = vadd.f32 1.0, %v1181_v62  ;;  %v618_v25 = vmul.f32 %v586_v21, %v522_v55 }
 0x134   :  { %v621_v47 = vmul.f32 %v589_v9, %v525_v12 }
 0x135   :  { %v619_v7 = vmul.f32 %v587_v26, %v523_v51 }
 0x136   :  { %v637_v14 = vpack.c.bf16 %v621_v47, %v620_v10 }
 0x137   :  { %v636_v17 = vpack.c.bf16 %v619_v7, %v618_v25 }
 0x138   :  { %1069 = vmatmul.mubr.bf16.gmra.mrb[20].mxu1 %v635_v61 }
 0x139   :  { %1072 = vmatprep.mubr.bf16.mxu1 %v636_v17 }
 0x140   :  { %1073 = vmatmul.mubr.bf16.gmra.mrb[24].mxu1 %v637_v14 }
 0x1d6   :  { %v1046_v63 = vpop.f32.mrb[32].mxu0 }
 0x1d7   :  { %v752_v43 = vadd.f32 %v1046_v63, %v1469_v24  ;;  %v743_v18 = vpop.f32.mrb[33].mxu0 }
 0x1d8   :  { %v744_v1 = vadd.f32 %v1469_v24, %v743_v18  ;;  %v1047_v19 = vpop.f32.mrb[34].mxu0 }
 0x1d9   :  { %872 = vst.msk [vmem:[%s1636_s5 + $0x10] sm:$0xff] %vm156_vm0, %v752_v43  ;;  %v755_v22 = vadd.f32 %v1047_v19, %v1469_v24  ;;  %v746_v49 = vpop.f32.mrb[35].mxu0 }
 0x1da   :  { %870 = vst.msk [vmem:[%s1636_s5] sm:$0xff] %vm156_vm0, %v744_v1  ;;  %v747_v50 = vadd.f32 %v1469_v24, %v746_v49 }
 0x1db   :  { %873 = vst.msk [vmem:[%s1636_s5 + $0x18] sm:$0xff] %vm156_vm0, %v755_v22 }
 0x1dc   :  { %871 = vst.msk [vmem:[%s1636_s5 + $0x8] sm:$0xff] %vm156_vm0, %v747_v50 }
 0x1e0   :  { %v1050_v23 = vpop.f32.mrb[0].mxu1 }
 0x1e1   :  { %v768_v59 = vadd.f32 %v1050_v23, %v1469_v24  ;;  %v759_v29 = vpop.f32.mrb[1].mxu1 }
 0x1e2   :  { %v760_v31 = vadd.f32 %v1469_v24, %v759_v29  ;;  %v1051_v34 = vpop.f32.mrb[2].mxu1 }
 0x1e3   :  { %876 = vst.msk [vmem:[%s1636_s5 + $0x30] sm:$0xff] %vm156_vm0, %v768_v59  ;;  %v771_v2 = vadd.f32 %v1051_v34, %v1469_v24  ;;  %v762_v28 = vpop.f32.mrb[3].mxu1 }
 0x1e4   :  { %874 = vst.msk [vmem:[%s1636_s5 + $0x20] sm:$0xff] %vm156_vm0, %v760_v31  ;;  %v763_v13 = vadd.f32 %v1469_v24, %v762_v28 }
 0x1e5   :  { %877 = vst.msk [vmem:[%s1636_s5 + $0x38] sm:$0xff] %vm156_vm0, %v771_v2 }
 0x1e6   :  { %875 = vst.msk [vmem:[%s1636_s5 + $0x28] sm:$0xff] %vm156_vm0, %v763_v13 }
 0x1ea   :  { %v1054_v16 = vpop.f32.mrb[4].mxu1 }
 0x1eb   :  { %v784_v30 = vadd.f32 %v1054_v16, %v1469_v24  ;;  %v775_v38 = vpop.f32.mrb[5].mxu1 }
 0x1ec   :  { %v776_v32 = vadd.f32 %v1469_v24, %v775_v38  ;;  %v1055_v39 = vpop.f32.mrb[6].mxu1 }
 0x1ed   :  { %880 = vst.msk [vmem:[%s1636_s5 + $0x50] sm:$0xff] %vm156_vm0, %v784_v30  ;;  %v787_v8 = vadd.f32 %v1055_v39, %v1469_v24  ;;  %v778_v27 = vpop.f32.mrb[7].mxu1 }
 0x1ee   :  { %878 = vst.msk [vmem:[%s1636_s5 + $0x40] sm:$0xff] %vm156_vm0, %v776_v32  ;;  %v779_v35 = vadd.f32 %v1469_v24, %v778_v27 }
 0x1ef   :  { %881 = vst.msk [vmem:[%s1636_s5 + $0x58] sm:$0xff] %vm156_vm0, %v787_v8 }
 0x1f0   :  { %879 = vst.msk [vmem:[%s1636_s5 + $0x48] sm:$0xff] %vm156_vm0, %v779_v35 }
 0x1f3   :  { %v1058_v40 = vpop.f32.mrb[8].mxu1 }
 0x1f4   :  { %v800_v57 = vadd.f32 %v1058_v40, %v1469_v24  ;;  %v791_v42 = vpop.f32.mrb[9].mxu1 }
 0x1f5   :  { %v792_v44 = vadd.f32 %v1469_v24, %v791_v42  ;;  %v1059_v6 = vpop.f32.mrb[10].mxu1 }
 0x1f6   :  { %884 = vst.msk [vmem:[%s1636_s5 + $0x70] sm:$0xff] %vm156_vm0, %v800_v57  ;;  %v803_v11 = vadd.f32 %v1059_v6, %v1469_v24  ;;  %v794_v20 = vpop.f32.mrb[11].mxu1 }
 0x1f7   :  { %882 = vst.msk [vmem:[%s1636_s5 + $0x60] sm:$0xff] %vm156_vm0, %v792_v44  ;;  %v795_v46 = vadd.f32 %v1469_v24, %v794_v20 }
 0x1f8   :  { %885 = vst.msk [vmem:[%s1636_s5 + $0x78] sm:$0xff] %vm156_vm0, %v803_v11 }
 0x1f9   :  { %883 = vst.msk [vmem:[%s1636_s5 + $0x68] sm:$0xff] %vm156_vm0, %v795_v46 }
 0x1fb   :  { %v1062_v36 = vpop.f32.mrb[12].mxu1 }
 0x1fc   :  { %v816_v48 = vadd.f32 %v1062_v36, %v1469_v24  ;;  %v807_v5 = vpop.f32.mrb[13].mxu1 }
 0x1fd   :  { %v808_v52 = vadd.f32 %v1469_v24, %v807_v5  ;;  %v1063_v53 = vpop.f32.mrb[14].mxu1 }
 0x1fe   :  { %888 = vst.msk [vmem:[%s1636_s5 + $0x90] sm:$0xff] %vm156_vm0, %v816_v48  ;;  %v819_v54 = vadd.f32 %v1063_v53, %v1469_v24  ;;  %v810_v56 = vpop.f32.mrb[15].mxu1 }
 0x1ff   :  { %886 = vst.msk [vmem:[%s1636_s5 + $0x80] sm:$0xff] %vm156_vm0, %v808_v52  ;;  %v811_v58 = vadd.f32 %v1469_v24, %v810_v56 }
 0x200   :  { %889 = vst.msk [vmem:[%s1636_s5 + $0x98] sm:$0xff] %vm156_vm0, %v819_v54 }
 0x201   :  { %887 = vst.msk [vmem:[%s1636_s5 + $0x88] sm:$0xff] %vm156_vm0, %v811_v58 }
 0x203   :  { %v1066_v60 = vpop.f32.mrb[16].mxu1 }
 0x204   :  { %v832_v33 = vadd.f32 %v1066_v60, %v1469_v24  ;;  %v823_v41 = vpop.f32.mrb[17].mxu1 }
 0x205   :  { %v824_v15 = vadd.f32 %v1469_v24, %v823_v41  ;;  %v1067_v61 = vpop.f32.mrb[18].mxu1 }
 0x206   :  { %892 = vst.msk [vmem:[%s1636_s5 + $0xb0] sm:$0xff] %vm156_vm0, %v832_v33  ;;  %v835_v45 = vadd.f32 %v1067_v61, %v1469_v24  ;;  %v826_v4 = vpop.f32.mrb[19].mxu1 }
 0x207   :  { %890 = vst.msk [vmem:[%s1636_s5 + $0xa0] sm:$0xff] %vm156_vm0, %v824_v15  ;;  %v827_v3 = vadd.f32 %v1469_v24, %v826_v4 }
 0x208   :  { %893 = vst.msk [vmem:[%s1636_s5 + $0xb8] sm:$0xff] %vm156_vm0, %v835_v45 }
 0x209   :  { %891 = vst.msk [vmem:[%s1636_s5 + $0xa8] sm:$0xff] %vm156_vm0, %v827_v3 }
 0x20b   :  { %v1070_v37 = vpop.f32.mrb[20].mxu1 }
 0x20c   :  { %v848_v21 = vadd.f32 %v1070_v37, %v1469_v24  ;;  %v839_v62 = vpop.f32.mrb[21].mxu1 }
 0x20d   :  { %v840_v0 = vadd.f32 %v1469_v24, %v839_v62  ;;  %v1071_v12 = vpop.f32.mrb[22].mxu1 }
 0x20e   :  { %896 = vst.msk [vmem:[%s1636_s5 + $0xd0] sm:$0xff] %vm156_vm0, %v848_v21  ;;  %v851_v9 = vadd.f32 %v1071_v12, %v1469_v24  ;;  %v842_v55 = vpop.f32.mrb[23].mxu1 }
 0x20f   :  { %894 = vst.msk [vmem:[%s1636_s5 + $0xc0] sm:$0xff] %vm156_vm0, %v840_v0  ;;  %v843_v51 = vadd.f32 %v1469_v24, %v842_v55 }
 0x210   :  { %897 = vst.msk [vmem:[%s1636_s5 + $0xd8] sm:$0xff] %vm156_vm0, %v851_v9 }
 0x211   :  { %895 = vst.msk [vmem:[%s1636_s5 + $0xc8] sm:$0xff] %vm156_vm0, %v843_v51 }
 0x213   :  { %v1074_v26 = vpop.f32.mrb[24].mxu1 }
 0x214   :  { %v864_v10 = vadd.f32 %v1074_v26, %v1469_v24  ;;  %v855_v47 = vpop.f32.mrb[25].mxu1 }
 0x215   :  { %v856_v25 = vadd.f32 %v1469_v24, %v855_v47  ;;  %v1075_v7 = vpop.f32.mrb[26].mxu1 }
 0x216   :  { %900 = vst.msk [vmem:[%s1636_s5 + $0xf0] sm:$0xff] %vm156_vm0, %v864_v10  ;;  %v867_v14 = vadd.f32 %v1075_v7, %v1469_v24  ;;  %v858_v17 = vpop.f32.mrb[27].mxu1 }
 0x217   :  { %898 = vst.msk [vmem:[%s1636_s5 + $0xe0] sm:$0xff] %vm156_vm0, %v856_v25  ;;  %v859_v63 = vadd.f32 %v1469_v24, %v858_v17 }
 0x218   :  { %901 = vst.msk [vmem:[%s1636_s5 + $0xf8] sm:$0xff] %vm156_vm0, %v867_v14 }
 0x219   :  { %899 = vst.msk [vmem:[%s1636_s5 + $0xe8] sm:$0xff] %vm156_vm0, %v859_v63 }

</bundles_post_ra>
